<compile_context>
chip_gen: v5e
topology: v5e:2x2
jax: 0.10.0
libtpu: 0.0.40
codegen_flags: <defaults>
</compile_context>

<pallas_src>
import functools

import jax
import jax.numpy as jnp
from jax.experimental import pallas as pl
from jax.experimental.pallas import tpu as pltpu

# ---------------------------------------------------------------------------
# Problem sizes (small, consistent with the module's forward)
# ---------------------------------------------------------------------------
BATCH = 256                 # env rows; lives on the 128-wide lane axis
DISEASE_NUM = 4
SYMPTOM_NUM = 8
STATE_DIM = DISEASE_NUM + SYMPTOM_NUM      # preprocess input dim
HIDDEN = 32
PROB_THRESHOLD = 0.95
MAX_TURN = 20.0


# ---------------------------------------------------------------------------
# Pallas kernel: preprocess MLP + clamp + transformer max-pool + per-row
# gating, fused in one VMEM-resident kernel.  Batch-on-lanes (transposed)
# layout; one grid step handles tile_b rows.
# ---------------------------------------------------------------------------
def _actor_kernel(x_ref, w1t_ref, b1t_ref, w2t_ref, b2t_ref, tmt_ref, out_ref,
                  *, state_dim, disease_num, symptom_num, threshold, max_turn):
    x = x_ref[...]                           # [state_dim+1, Tb]; last row = turn
    w1t = w1t_ref[...]                       # [HIDDEN, state_dim+1] (turn col zeroed)
    b1t = b1t_ref[...]                       # [HIDDEN, 1]
    w2t = w2t_ref[...]                       # [D, HIDDEN]
    b2t = b2t_ref[...]                       # [D, 1]
    tmt = tmt_ref[...]                       # [S, D]  (transformer_matrix^T)
    turn = x[state_dim:state_dim + 1, :]     # [1, Tb]

    # --- preprocess net (2-layer MLP) + torch.clamp(., 0, 1), transposed ----
    # h^T = relu(W1^T s^T + b1^T); the padded zero row of W1 makes the folded
    # turn row contribute nothing.
    h = jnp.maximum(
        jnp.dot(w1t, x, preferred_element_type=jnp.float32) + b1t, 0.0)
    # p^T = clamp(W2^T h^T + b2^T, 0, 1)  -> [D, Tb]   (== aa^T)
    p = jnp.clip(
        jnp.dot(w2t, h, preferred_element_type=jnp.float32) + b2t, 0.0, 1.0)

    # --- logits^T[s, b] = max_d( tmat[d, s] * p^T[d, b] )  -> [S, Tb] --------
    # Unrolled over the small disease axis; pure VALU broadcasts/maxes, the
    # running row-max of the disease probabilities rides along for free.
    row0 = p[0:1, :]                               # [1, Tb]
    logits = tmt[:, 0:1] * row0                    # [S,1]*[1,Tb] -> [S, Tb]
    max_p = row0
    for d in range(1, disease_num):
        row = p[d:d + 1, :]
        logits = jnp.maximum(logits, tmt[:, d:d + 1] * row)
        max_p = jnp.maximum(max_p, row)

    # --- sym_sum: unrolled sum over the S sublane rows (VALU, no XLU reduce) -
    sym_sum = logits[0:1, :]
    for sidx in range(1, symptom_num):
        sym_sum = sym_sum + logits[sidx:sidx + 1, :]

    # --- per-row gating (vectorized form of the python for-loop) ------------
    # No 'history' key => mask is statically all-ones: the mask multiply and
    # the (mask.sum()==0) gate term are provably identity / false -> removed.
    gate = ((max_p >= threshold)          # (max prob >= threshold) and not training
            | (sym_sum == 0.0)            # symptom logits sum == 0
            | (turn >= max_turn))         # info['turn'][k] >= max_turn   [1, Tb]

    # gate True  -> keep disease rows, zero symptom rows
    # gate False -> zero disease rows, keep symptom rows
    # Two sublane-range, full-lane-width stores (no lane-axis concat).
    out_ref[0:disease_num, :] = jnp.where(gate, p, 0.0)        # [D, Tb]
    out_ref[disease_num:, :] = jnp.where(gate, 0.0, logits)    # [S, Tb]


def my_actor_forward(s, w1, b1, w2, b2, tmat, turn, *, tile_b=None):
    """Wrapper: s [B, STATE_DIM] f32, turn [B, 1] -> logits [B, D+S] f32."""
    batch, state_dim = s.shape
    hidden = w1.shape[1]
    disease_num, symptom_num = tmat.shape
    out_dim = disease_num + symptom_num
    if tile_b is None:
        tile_b = batch                     # single grid step: overhead-bound size
    assert batch % tile_b == 0, "batch must be a multiple of the lane tile"

    # ---- wrapper-side layout plumbing: batch-on-lanes (transposed) ----------
    # Fold turn into the activation block as an extra feature row; pad W1 with
    # a matching zero row so the folded row is ignored by the matmul.
    x_t = jnp.concatenate([s, turn], axis=-1).T                     # [state_dim+1, B]
    w1t = jnp.concatenate([w1, jnp.zeros((1, hidden), w1.dtype)], axis=0).T
    b1t = b1.T                                                      # [HIDDEN, 1]
    w2t = w2.T                                                      # [D, HIDDEN]
    b2t = b2.T                                                      # [D, 1]
    tmt = tmat.T                                                    # [S, D]

    kernel = functools.partial(
        _actor_kernel,
        state_dim=state_dim,
        disease_num=disease_num,
        symptom_num=symptom_num,
        threshold=PROB_THRESHOLD,
        max_turn=MAX_TURN,
    )

    # Weights / transformer matrix: full-array blocks, constant index_map
    # -> loaded once, VMEM-resident across all grid steps.
    # (pipeline_mode=pl.Buffered(1) would drop the dead second buffer, but the
    #  grid is a single step here so there is nothing to pipeline.)
    def _const(shape):
        return pl.BlockSpec(shape, lambda i: (0, 0))

    out_t = pl.pallas_call(
        kernel,
        out_shape=jax.ShapeDtypeStruct((out_dim, batch), jnp.float32),
        grid=(batch // tile_b,),
        in_specs=[
            pl.BlockSpec((state_dim + 1, tile_b), lambda i: (0, i)),  # s^T + turn row
            _const((hidden, state_dim + 1)),                          # W1^T (padded)
            _const((hidden, 1)),                                      # b1^T
            _const((disease_num, hidden)),                            # W2^T
            _const((disease_num, 1)),                                 # b2^T
            _const((symptom_num, disease_num)),                       # tmat^T
        ],
        out_specs=pl.BlockSpec((out_dim, tile_b), lambda i: (0, i)),
        compiler_params=pltpu.CompilerParams(
            dimension_semantics=("parallel",)),   # no-op at grid=(1,); scales if tiled
    )(x_t, w1t, b1t, w2t, b2t, tmt)

    return out_t.T                                                  # [B, D+S]


# ---------------------------------------------------------------------------
# Pure-JAX reference (mirrors the PyTorch forward) for a sanity check.
# ---------------------------------------------------------------------------
def _reference(s, w1, b1, w2, b2, tmat, turn):
    h = jnp.maximum(s @ w1 + b1, 0.0)
    p = jnp.clip(h @ w2 + b2, 0.0, 1.0)
    logits = jnp.max(p[:, :, None] * tmat[None, :, :], axis=1)
    mask = jnp.ones_like(logits)
    logits = logits * mask
    gate = ((jnp.max(p, axis=-1, keepdims=True) >= PROB_THRESHOLD)
            | (jnp.sum(mask, axis=-1, keepdims=True) == 0.0)
            | (jnp.sum(logits, axis=-1, keepdims=True) == 0.0)
            | (turn >= MAX_TURN))
    return jnp.concatenate(
        [jnp.where(gate, p, 0.0), jnp.where(gate, 0.0, logits)], axis=-1)


if __name__ == "__main__":
    key = jax.random.PRNGKey(0)
    ks = jax.random.split(key, 7)

    # Deterministic synthetic inputs / parameters.
    s = jax.random.uniform(ks[0], (BATCH, STATE_DIM), jnp.float32)
    w1 = jax.random.normal(ks[1], (STATE_DIM, HIDDEN), jnp.float32) * 0.2
    b1 = jax.random.normal(ks[2], (1, HIDDEN), jnp.float32) * 0.05
    w2 = jax.random.normal(ks[3], (HIDDEN, DISEASE_NUM), jnp.float32) * 0.2
    b2 = jax.random.normal(ks[4], (1, DISEASE_NUM), jnp.float32) * 0.05
    # transformer_matrix in [0, 1] (co-occurrence style), fixed (transfor_grad=False)
    tmat = jax.random.uniform(ks[5], (DISEASE_NUM, SYMPTOM_NUM), jnp.float32)
    # info['turn'] per-row counters (mix below / above max_turn)
    turn = jnp.floor(
        jax.random.uniform(ks[6], (BATCH, 1), jnp.float32) * (MAX_TURN + 2.0))

    out = my_actor_forward(s, w1, b1, w2, b2, tmat, turn)
    out = jax.block_until_ready(out)

    ref = _reference(s, w1, b1, w2, b2, tmat, turn)
    assert out.shape == (BATCH, DISEASE_NUM + SYMPTOM_NUM)
    assert jnp.allclose(out, ref, atol=1e-5, rtol=1e-5), "mismatch vs reference"

    # TODO(synk): feature_model >= 2 branches (extra MLP head / learned beta
    # mixing of two transformer matrices) and the 'history'-based mask are not
    # exercised in this configuration.
    print("KERNEL_OK")
</pallas_src>

<mosaic_0001>
module attributes {stable_mosaic.version = 11 : i64} {
  func.func @_actor_kernel(%arg0: i32, %arg1: memref<13x256xf32, #tpu.memory_space<vmem>>, %arg2: memref<32x13xf32, #tpu.memory_space<vmem>>, %arg3: memref<32x1xf32, #tpu.memory_space<vmem>>, %arg4: memref<4x32xf32, #tpu.memory_space<vmem>>, %arg5: memref<4x1xf32, #tpu.memory_space<vmem>>, %arg6: memref<8x4xf32, #tpu.memory_space<vmem>>, %arg7: memref<12x256xf32, #tpu.memory_space<vmem>>) attributes {dimension_semantics = [#tpu.dimension_semantics<parallel>], iteration_bounds = array<i64: 1>, scalar_prefetch = 0 : i64, scratch_operands = 0 : i64, tpu.core_type = #tpu.core_type<tc>, window_params = [{transform_indices = @transform_0, window_bounds = array<i64: 13, 256>}, {pipeline_mode = #tpu.pipeline_mode<synchronous>, transform_indices = @transform_1, window_bounds = array<i64: 32, 13>}, {pipeline_mode = #tpu.pipeline_mode<synchronous>, transform_indices = @transform_2, window_bounds = array<i64: 32, 1>}, {pipeline_mode = #tpu.pipeline_mode<synchronous>, transform_indices = @transform_3, window_bounds = array<i64: 4, 32>}, {pipeline_mode = #tpu.pipeline_mode<synchronous>, transform_indices = @transform_4, window_bounds = array<i64: 4, 1>}, {pipeline_mode = #tpu.pipeline_mode<synchronous>, transform_indices = @transform_5, window_bounds = array<i64: 8, 4>}, {transform_indices = @transform_6, window_bounds = array<i64: 12, 256>}]} {
    %c0 = arith.constant 0 : index
    %c0_0 = arith.constant 0 : index
    %0 = vector.load %arg1[%c0, %c0_0] : memref<13x256xf32, #tpu.memory_space<vmem>>, vector<13x256xf32>
    %c0_1 = arith.constant 0 : index
    %c0_2 = arith.constant 0 : index
    %1 = vector.load %arg2[%c0_1, %c0_2] : memref<32x13xf32, #tpu.memory_space<vmem>>, vector<32x13xf32>
    %c0_3 = arith.constant 0 : index
    %c0_4 = arith.constant 0 : index
    %2 = vector.load %arg3[%c0_3, %c0_4] : memref<32x1xf32, #tpu.memory_space<vmem>>, vector<32x1xf32>
    %c0_5 = arith.constant 0 : index
    %c0_6 = arith.constant 0 : index
    %3 = vector.load %arg4[%c0_5, %c0_6] : memref<4x32xf32, #tpu.memory_space<vmem>>, vector<4x32xf32>
    %c0_7 = arith.constant 0 : index
    %c0_8 = arith.constant 0 : index
    %4 = vector.load %arg5[%c0_7, %c0_8] : memref<4x1xf32, #tpu.memory_space<vmem>>, vector<4x1xf32>
    %c0_9 = arith.constant 0 : index
    %c0_10 = arith.constant 0 : index
    %5 = vector.load %arg6[%c0_9, %c0_10] : memref<8x4xf32, #tpu.memory_space<vmem>>, vector<8x4xf32>
    %6 = vector.extract_strided_slice %0 {offsets = [12, 0], sizes = [1, 256], strides = [1, 1]} : vector<13x256xf32> to vector<1x256xf32>
    %cst = arith.constant dense<0.000000e+00> : vector<32x256xf32>
    %7 = tpu.matmul %1, %0, %cst {dimension_numbers = #tpu.dot_dimension_numbers<[1], [0], [0], [1], [0, 0, 1, 1], [], []>} : vector<32x13xf32>, vector<13x256xf32>, vector<32x256xf32> -> vector<32x256xf32>
    %8 = vector.broadcast %2 : vector<32x1xf32> to vector<32x256xf32>
    %9 = arith.addf %7, %8 : vector<32x256xf32>
    %cst_11 = arith.constant 0.000000e+00 : f32
    %10 = vector.broadcast %cst_11 : f32 to vector<32x256xf32>
    %11 = arith.maximumf %9, %10 : vector<32x256xf32>
    %cst_12 = arith.constant dense<0.000000e+00> : vector<4x256xf32>
    %12 = tpu.matmul %3, %11, %cst_12 {dimension_numbers = #tpu.dot_dimension_numbers<[1], [0], [0], [1], [0, 0, 1, 1], [], []>} : vector<4x32xf32>, vector<32x256xf32>, vector<4x256xf32> -> vector<4x256xf32>
    %13 = vector.broadcast %4 : vector<4x1xf32> to vector<4x256xf32>
    %14 = arith.addf %12, %13 : vector<4x256xf32>
    %cst_13 = arith.constant 0.000000e+00 : f32
    %cst_14 = arith.constant 1.000000e+00 : f32
    %15 = vector.broadcast %cst_13 : f32 to vector<4x256xf32>
    %16 = arith.maximumf %15, %14 : vector<4x256xf32>
    %17 = vector.broadcast %cst_14 : f32 to vector<4x256xf32>
    %18 = arith.minimumf %17, %16 : vector<4x256xf32>
    %19 = vector.extract_strided_slice %18 {offsets = [0, 0], sizes = [1, 256], strides = [1, 1]} : vector<4x256xf32> to vector<1x256xf32>
    %20 = vector.extract_strided_slice %5 {offsets = [0, 0], sizes = [8, 1], strides = [1, 1]} : vector<8x4xf32> to vector<8x1xf32>
    %21 = vector.broadcast %20 : vector<8x1xf32> to vector<8x256xf32>
    %22 = vector.broadcast %19 : vector<1x256xf32> to vector<8x256xf32>
    %23 = arith.mulf %21, %22 : vector<8x256xf32>
    %24 = vector.extract_strided_slice %18 {offsets = [1, 0], sizes = [1, 256], strides = [1, 1]} : vector<4x256xf32> to vector<1x256xf32>
    %25 = vector.extract_strided_slice %5 {offsets = [0, 1], sizes = [8, 1], strides = [1, 1]} : vector<8x4xf32> to vector<8x1xf32>
    %26 = vector.broadcast %25 : vector<8x1xf32> to vector<8x256xf32>
    %27 = vector.broadcast %24 : vector<1x256xf32> to vector<8x256xf32>
    %28 = arith.mulf %26, %27 : vector<8x256xf32>
    %29 = arith.maximumf %23, %28 : vector<8x256xf32>
    %30 = arith.maximumf %19, %24 : vector<1x256xf32>
    %31 = vector.extract_strided_slice %18 {offsets = [2, 0], sizes = [1, 256], strides = [1, 1]} : vector<4x256xf32> to vector<1x256xf32>
    %32 = vector.extract_strided_slice %5 {offsets = [0, 2], sizes = [8, 1], strides = [1, 1]} : vector<8x4xf32> to vector<8x1xf32>
    %33 = vector.broadcast %32 : vector<8x1xf32> to vector<8x256xf32>
    %34 = vector.broadcast %31 : vector<1x256xf32> to vector<8x256xf32>
    %35 = arith.mulf %33, %34 : vector<8x256xf32>
    %36 = arith.maximumf %29, %35 : vector<8x256xf32>
    %37 = arith.maximumf %30, %31 : vector<1x256xf32>
    %38 = vector.extract_strided_slice %18 {offsets = [3, 0], sizes = [1, 256], strides = [1, 1]} : vector<4x256xf32> to vector<1x256xf32>
    %39 = vector.extract_strided_slice %5 {offsets = [0, 3], sizes = [8, 1], strides = [1, 1]} : vector<8x4xf32> to vector<8x1xf32>
    %40 = vector.broadcast %39 : vector<8x1xf32> to vector<8x256xf32>
    %41 = vector.broadcast %38 : vector<1x256xf32> to vector<8x256xf32>
    %42 = arith.mulf %40, %41 : vector<8x256xf32>
    %43 = arith.maximumf %36, %42 : vector<8x256xf32>
    %44 = arith.maximumf %37, %38 : vector<1x256xf32>
    %45 = vector.extract_strided_slice %43 {offsets = [0, 0], sizes = [1, 256], strides = [1, 1]} : vector<8x256xf32> to vector<1x256xf32>
    %46 = vector.extract_strided_slice %43 {offsets = [1, 0], sizes = [1, 256], strides = [1, 1]} : vector<8x256xf32> to vector<1x256xf32>
    %47 = arith.addf %45, %46 : vector<1x256xf32>
    %48 = vector.extract_strided_slice %43 {offsets = [2, 0], sizes = [1, 256], strides = [1, 1]} : vector<8x256xf32> to vector<1x256xf32>
    %49 = arith.addf %47, %48 : vector<1x256xf32>
    %50 = vector.extract_strided_slice %43 {offsets = [3, 0], sizes = [1, 256], strides = [1, 1]} : vector<8x256xf32> to vector<1x256xf32>
    %51 = arith.addf %49, %50 : vector<1x256xf32>
    %52 = vector.extract_strided_slice %43 {offsets = [4, 0], sizes = [1, 256], strides = [1, 1]} : vector<8x256xf32> to vector<1x256xf32>
    %53 = arith.addf %51, %52 : vector<1x256xf32>
    %54 = vector.extract_strided_slice %43 {offsets = [5, 0], sizes = [1, 256], strides = [1, 1]} : vector<8x256xf32> to vector<1x256xf32>
    %55 = arith.addf %53, %54 : vector<1x256xf32>
    %56 = vector.extract_strided_slice %43 {offsets = [6, 0], sizes = [1, 256], strides = [1, 1]} : vector<8x256xf32> to vector<1x256xf32>
    %57 = arith.addf %55, %56 : vector<1x256xf32>
    %58 = vector.extract_strided_slice %43 {offsets = [7, 0], sizes = [1, 256], strides = [1, 1]} : vector<8x256xf32> to vector<1x256xf32>
    %59 = arith.addf %57, %58 : vector<1x256xf32>
    %cst_15 = arith.constant 0.949999988 : f32
    %60 = vector.broadcast %cst_15 : f32 to vector<1x256xf32>
    %61 = arith.cmpf oge, %44, %60 : vector<1x256xf32>
    %cst_16 = arith.constant 0.000000e+00 : f32
    %62 = vector.broadcast %cst_16 : f32 to vector<1x256xf32>
    %63 = arith.cmpf oeq, %59, %62 : vector<1x256xf32>
    %64 = arith.ori %61, %63 : vector<1x256xi1>
    %cst_17 = arith.constant 2.000000e+01 : f32
    %65 = vector.broadcast %cst_17 : f32 to vector<1x256xf32>
    %66 = arith.cmpf oge, %6, %65 : vector<1x256xf32>
    %67 = arith.ori %64, %66 : vector<1x256xi1>
    %cst_18 = arith.constant 0.000000e+00 : f32
    %68 = vector.shape_cast %67 : vector<1x256xi1> to vector<1x256xi1>
    %69 = vector.broadcast %68 : vector<1x256xi1> to vector<4x256xi1>
    %70 = vector.broadcast %cst_18 : f32 to vector<4x256xf32>
    %71 = arith.select %69, %18, %70 : vector<4x256xi1>, vector<4x256xf32>
    %c0_19 = arith.constant 0 : index
    %c0_20 = arith.constant 0 : index
    %72 = vector.load %arg7[%c0_19, %c0_20] : memref<12x256xf32, #tpu.memory_space<vmem>>, vector<4x256xf32>
    tpu.vector_store %arg7[%c0_19, %c0_20], %71 {strides = array<i32>} : memref<12x256xf32, #tpu.memory_space<vmem>>, vector<4x256xf32>,
    %cst_21 = arith.constant 0.000000e+00 : f32
    %73 = vector.shape_cast %67 : vector<1x256xi1> to vector<1x256xi1>
    %74 = vector.broadcast %73 : vector<1x256xi1> to vector<8x256xi1>
    %75 = vector.broadcast %cst_21 : f32 to vector<8x256xf32>
    %76 = arith.select %74, %75, %43 : vector<8x256xi1>, vector<8x256xf32>
    %c4 = arith.constant 4 : index
    %c0_22 = arith.constant 0 : index
    %77 = vector.load %arg7[%c4, %c0_22] : memref<12x256xf32, #tpu.memory_space<vmem>>, vector<8x256xf32>
    tpu.vector_store %arg7[%c4, %c0_22], %76 {strides = array<i32>} : memref<12x256xf32, #tpu.memory_space<vmem>>, vector<8x256xf32>,
    return
  }
  func.func @transform_0(%arg0: i32) -> (i32, i32) {
    %c0_i32 = arith.constant 0 : i32
    %c0_i32_0 = arith.constant 0 : i32
    return %c0_i32, %arg0 : i32, i32
  }
  func.func @transform_1(%arg0: i32) -> (i32, i32) {
    %c0_i32 = arith.constant 0 : i32
    %c0_i32_0 = arith.constant 0 : i32
    %c0_i32_1 = arith.constant 0 : i32
    return %c0_i32, %c0_i32_0 : i32, i32
  }
  func.func @transform_2(%arg0: i32) -> (i32, i32) {
    %c0_i32 = arith.constant 0 : i32
    %c0_i32_0 = arith.constant 0 : i32
    %c0_i32_1 = arith.constant 0 : i32
    return %c0_i32, %c0_i32_0 : i32, i32
  }
  func.func @transform_3(%arg0: i32) -> (i32, i32) {
    %c0_i32 = arith.constant 0 : i32
    %c0_i32_0 = arith.constant 0 : i32
    %c0_i32_1 = arith.constant 0 : i32
    return %c0_i32, %c0_i32_0 : i32, i32
  }
  func.func @transform_4(%arg0: i32) -> (i32, i32) {
    %c0_i32 = arith.constant 0 : i32
    %c0_i32_0 = arith.constant 0 : i32
    %c0_i32_1 = arith.constant 0 : i32
    return %c0_i32, %c0_i32_0 : i32, i32
  }
  func.func @transform_5(%arg0: i32) -> (i32, i32) {
    %c0_i32 = arith.constant 0 : i32
    %c0_i32_0 = arith.constant 0 : i32
    %c0_i32_1 = arith.constant 0 : i32
    return %c0_i32, %c0_i32_0 : i32, i32
  }
  func.func @transform_6(%arg0: i32) -> (i32, i32) {
    %c0_i32 = arith.constant 0 : i32
    %c0_i32_0 = arith.constant 0 : i32
    return %c0_i32, %arg0 : i32, i32
  }
}

</mosaic_0001>

<bundles_post_ra>
// kernel: tpu_custom_call.1
= control target key start
LH: loop header
LB: loop body
LE: loop exit
PB: predicated region body
PF: predicated region fallthrough
CT: control target
= control target key end

     0   :  { %vm72_vm0 = vcmask 1044480   ;;  %vm59_vm1 = vcmask 105472   ;;  %s572_s0 = inlined_call_operand.vmem [shape: f32[13,256], index: 0, kind: input, shape index: {}]   ;;  %s573_s1 = inlined_call_operand.vmem [shape: f32[32,13], index: 1, kind: input, shape index: {}]   ;;  %s574_s2 = inlined_call_operand.vmem [shape: f32[32,1], index: 2, kind: input, shape index: {}]   ;;  %s575_s3 = inlined_call_operand.vmem [shape: f32[4,32], index: 3, kind: input, shape index: {}]   ;;  %s576_s4 = inlined_call_operand.vmem [shape: f32[4,1], index: 4, kind: input, shape index: {}]   ;;  %s577_s5 = inlined_call_operand.vmem [shape: f32[8,4], index: 5, kind: input, shape index: {}]   ;;  %s578_s6 = inlined_call_operand.hbm [shape: f32[12,256], index: 6, kind: output, shape index: {}]  }
   0x1   :  { %v458_v0 = vld [vmem:[%s572_s0 + $0x10] sm:$0x1f]  ;;  %v463_v1 = vld [vmem:[%s572_s0 + $0x18] sm:$0x1f]  ;;  %v24_v2 = vld [vmem:[%s572_s0] sm:$0xff] }
   0x2   :  { %357 = vmatpush.msk.msra.mxu0 %vm72_vm0, %v458_v0  ;;  %362 = vmatpush.msk.msra.mxu1 %vm72_vm0, %v463_v1  ;;  %v25_v3 = vld [vmem:[%s572_s0 + $0x8] sm:$0xff]  ;;  %v28_v4 = vld [vmem:[%s573_s1] sm:$0xff]  ;;  %v31_v5 = vld [vmem:[%s573_s1 + $0x18] sm:$0xff] }
   0x3   :  { %369 = vmatpush.msk.msra.mxu2 %vm72_vm0, %v458_v0  ;;  %371 = vmatpush.msk.msra.mxu3 %vm72_vm0, %v463_v1  ;;  %v33_v6 = vld [vmem:[%s574_s2 + $0x8] sm:$0xff] }
   0x4   :  { %94 = vmatpush.msra.mxu0 %v24_v2  ;;  %123 = vmatpush.msra.mxu1 %v25_v3 }
   0x5   :  { %358 = vmatmul.msk.f32.vlgmr.msra.gmra.mxu0 %vm59_vm1, %v28_v4  ;;  %363 = vmatmul.msk.f32.vlgmr.msra.gmra.mxu1 %vm59_vm1, %v28_v4 }
   0x6   :  { %11 = vsyncpa [#allocation3], 0  ;;  %370 = vmatpush.msra.mxu2 %v24_v2  ;;  %372 = vmatpush.msra.mxu3 %v25_v3  ;;  %v413_v7 = vmov 0   ;;  %v35_v8 = vld [vmem:[%s574_s2 + $0x18] sm:$0xff]  ;;  %v29_v9 = vld [vmem:[%s573_s1 + $0x8] sm:$0xff]  ;;  %v414_v15 = vmov 1  }
   0x7   :  { %381 = vset.pattern.permute.xlu1 %v413_v7  ;;  %361 = vmatmul.msk.f32.vlgmr.msra.gmra.mxu2 %vm59_vm1, %v31_v5  ;;  %v32_v10 = vld [vmem:[%s574_s2] sm:$0xff]  ;;  %v34_v11 = vld [vmem:[%s574_s2 + $0x10] sm:$0xff]  ;;  %v415_v16 = vmov 2   ;;  %v416_v20 = vmov 3   ;;  %vm150_vm2 = vcmask 261120   ;;  %vm307_vm3 = vcmp.ge.f32.partialorder %v458_v0, 20.0 }
   0x8   :  { %366 = vmatmul.msk.f32.vlgmr.msra.gmra.mxu3 %vm59_vm1, %v31_v5  ;;  %46 = vperm.xlu1 %381, %v33_v6   ;;  %v30_v12 = vld [vmem:[%s573_s1 + $0x10] sm:$0xff]  ;;  %v38_v13 = vld [vmem:[%s577_s5] sm:$0xff]  ;;  %vm308_vm4 = vcmp.ge.f32.partialorder %v463_v1, 20.0  ;;  %s345_s25 = sshll.u32 %s578_s6, 4  ;;  %s418_s26 = smov 256   ;;  %s346_s25 = int_to_ptr.hbm [resolvable:$true] %s345_s25 }
   0x9   :  { %380 = vset.pattern.permute.xlu0 %v413_v7  ;;  %382 = vset.pattern.permute.xlu2 %v413_v7  ;;  %v37_v14 = vld [vmem:[%s576_s4] sm:$0xf]  ;;  %s419_s27 = smov 16  }
   0xa   :  { %56 = vperm.xlu0 %380, %v35_v8   ;;  %147 = vperm.xlu2 %382, %v37_v14   ;;  %v36_v45 = vld [vmem:[%s575_s3] sm:$0xf]  ;;  %s417_s3 = smov [#allocation2]  }
   0xb   :  { %s343_s4 = sshll.u32 %s417_s3, 4  ;;  %s344_s4 = int_to_ptr.vmem [resolvable:$true] %s343_s4 }
   0xd   :  { %359 = vmatmul.msk.f32.gmra.mxu0 %vm59_vm1, %v29_v9  ;;  %364 = vmatmul.msk.f32.gmra.mxu1 %vm59_vm1, %v29_v9 }
  0x10   :  { %41 = vperm.xlu1 %381, %v32_v10  }
  0x12   :  { %51 = vperm.xlu0 %380, %v34_v11   ;;  %200 = vperm.xlu2 %382, %v38_v13  }
  0x15   :  { %360 = vmatmul.msk.f32.gmra.mxu0 %vm59_vm1, %v30_v12  ;;  %365 = vmatmul.msk.f32.gmra.mxu1 %vm59_vm1, %v30_v12 }
  0x18   :  { %384 = vset.pattern.permute.xlu1 %v415_v16 }
  0x19   :  { %226 = vperm.xlu1 %384, %v38_v13  }
  0x1a   :  { %383 = vset.pattern.permute.xlu0 %v414_v15  ;;  %385 = vset.pattern.permute.xlu2 %v416_v20 }
  0x1b   :  { %208 = vperm.xlu0 %383, %v38_v13   ;;  %242 = vperm.xlu2 %385, %v38_v13  }
  0x23   :  { %386 = vset.pattern.permute.xlu0 %v416_v20 }
  0x64   :  { %v148_v47 = vpop.permute.xlu2 %147 }
  0x6c   :  { %v201_v51 = vpop.permute.xlu2 %200 }
  0x75   :  { %v243_v6 = vpop.permute.xlu2 %242 }
  0x7a   :  { %v47_v19 = vpop.permute.xlu1 %46 }
  0x7c   :  { %v57_v21 = vpop.permute.xlu0 %56 }
  0x82   :  { %v96_v17 = vpop.f32.mrf.mxu0  ;;  %v125_v18 = vpop.f32.mrf.mxu1 }
  0x83   :  { %v42_v30 = vpop.permute.xlu1 %41 }
  0x84   :  { %v52_v31 = vpop.permute.xlu0 %51  ;;  %v97_v38 = vadd.f32 %v96_v17, %v42_v30  ;;  %v126_v40 = vadd.f32 %v125_v18, %v42_v30 }
  0x86   :  { %v137_v44 = vmax.f32 %v97_v38, 0.0  ;;  %v138_v46 = vmax.f32 %v126_v40, 0.0 }
  0x8a   :  { %v99_v22 = vpop.f32.mrf.mxu0  ;;  %v105_v23 = vpop.f32.mrf.mxu2 }
  0x8b   :  { %v106_v24 = vadd.f32 %v105_v23, %v57_v21  ;;  %v128_v25 = vpop.f32.mrf.mxu1  ;;  %v134_v26 = vpop.f32.mrf.mxu3  ;;  %v100_v33 = vadd.f32 %v99_v22, %v47_v19 }
  0x8c   :  { %v135_v27 = vadd.f32 %v134_v26, %v57_v21  ;;  %v129_v36 = vadd.f32 %v128_v25, %v47_v19  ;;  %v227_v63 = vpop.permute.xlu1 %226 }
  0x8d   :  { %v143_v28 = vmax.f32 %v106_v24, 0.0  ;;  %v139_v42 = vmax.f32 %v100_v33, 0.0  ;;  %v209_v57 = vpop.permute.xlu0 %208 }
  0x8e   :  { %v144_v29 = vmax.f32 %v135_v27, 0.0  ;;  %v140_v43 = vmax.f32 %v129_v36, 0.0 }
  0x8f   :  { %166 = vmatpush.msrb.mxu2 %v143_v28 }
  0x90   :  { %186 = vmatpush.msrb.mxu3 %v144_v29 }
  0x92   :  { %v102_v32 = vpop.f32.mrf.mxu0 }
  0x93   :  { %v103_v34 = vadd.f32 %v102_v32, %v52_v31  ;;  %v131_v35 = vpop.f32.mrf.mxu1 }
  0x94   :  { %v132_v37 = vadd.f32 %v131_v35, %v52_v31 }
  0x95   :  { %v141_v39 = vmax.f32 %v103_v34, 0.0 }
  0x96   :  { %v142_v41 = vmax.f32 %v132_v37, 0.0 }
  0x97   :  { %167 = vmatpush.msrb.mxu2 %v141_v39 }
  0x98   :  { %187 = vmatpush.msrb.mxu3 %v142_v41 }
  0x99   :  { %168 = vmatpush.msrb.mxu2 %v139_v42 }
  0x9a   :  { %188 = vmatpush.msrb.mxu3 %v140_v43 }
  0x9b   :  { %169 = vmatpush.msrb.mxu2 %v137_v44  ;;  %v309_v44 = vsel %vm307_vm3, 1, %v413_v7 }
  0x9c   :  { %189 = vmatpush.msrb.mxu3 %v138_v46  ;;  %367 = vmatmul.msk.f32.vlgmr.msrb.gmra.mxu2 %vm150_vm2, %v36_v45 }
  0x9d   :  { %368 = vmatmul.msk.f32.vlgmr.msrb.gmra.mxu3 %vm150_vm2, %v36_v45 }
 0x11f   :  { %v171_v48 = vpop.f32.mrf.mxu2 }
 0x120   :  { %v172_v49 = vadd.f32 %v171_v48, %v148_v47  ;;  %v191_v50 = vpop.f32.mrf.mxu3 }
 0x121   :  { %v192_v52 = vadd.f32 %v191_v50, %v148_v47  ;;  %v310_v47 = vsel %vm308_vm4, 1, %v413_v7 }
 0x122   :  { %v194_v53 = vmax.f32 %v172_v49, 0.0 }
 0x123   :  { %v195_v54 = vmax.f32 %v192_v52, 0.0 }
 0x124   :  { %v519_v55 = vmin.f32 %v194_v53, 1.0  ;;  %v311_v53 = vrot.slane %v309_v44, 4 }
 0x125   :  { %v521_v56 = vmin.f32 %v195_v54, 1.0 }
 0x126   :  { %v203_v58 = vperm.slane %v519_v55, 0  ;;  %v211_v59 = vperm.slane %v519_v55, 1  ;;  %v229_v60 = vperm.slane %v519_v55, 2  ;;  %v245_v3 = vperm.slane %v519_v55, 3 }
 0x127   :  { %v204_v61 = vperm.slane %v521_v56, 0  ;;  %v212_v62 = vperm.slane %v521_v56, 1  ;;  %v230_v2 = vperm.slane %v521_v56, 2  ;;  %v246_v8 = vperm.slane %v521_v56, 3 }
 0x128   :  { %v205_v4 = vmul.f32 %v203_v58, %v201_v51  ;;  %v213_v5 = vmul.f32 %v211_v59, %v209_v57  ;;  %v231_v12 = vmul.f32 %v229_v60, %v227_v63  ;;  %v247_v15 = vmul.f32 %v245_v3, %v243_v6 }
 0x129   :  { %v206_v9 = vmul.f32 %v204_v61, %v201_v51  ;;  %v214_v10 = vmul.f32 %v212_v62, %v209_v57  ;;  %v232_v14 = vmul.f32 %v230_v2, %v227_v63  ;;  %v248_v17 = vmul.f32 %v246_v8, %v243_v6 }
 0x12a   :  { %v215_v11 = vmax.f32 %v205_v4, %v213_v5  ;;  %v219_v22 = vrot.slane %v519_v55, 1  ;;  %v220_v24 = vrot.slane %v521_v56, 1  ;;  %v235_v35 = vrot.slane %v519_v55, 2 }
 0x12b   :  { %v216_v13 = vmax.f32 %v206_v9, %v214_v10  ;;  %v236_v38 = vrot.slane %v521_v56, 2  ;;  %v251_v48 = vrot.slane %v519_v55, 3  ;;  %v252_v50 = vrot.slane %v521_v56, 3 }
 0x12c   :  { %v233_v16 = vmax.f32 %v215_v11, %v231_v12  ;;  %v223_v30 = vmax.f32 %v519_v55, %v219_v22  ;;  %v224_v33 = vmax.f32 %v521_v56, %v220_v24  ;;  %v312_v59 = vrot.slane %v310_v47, 4 }
 0x12d   :  { %v234_v18 = vmax.f32 %v216_v13, %v232_v14  ;;  %vm313_vm5 = vcmp.ne.s32.totalorder %v311_v53, 0 }
 0x12e   :  { %v531_v19 = vmax.f32 %v233_v16, %v247_v15  ;;  %v239_v41 = vmax.f32 %v223_v30, %v235_v35  ;;  %v240_v45 = vmax.f32 %v224_v33, %v236_v38  ;;  %vm314_vm8 = vcmp.ne.s32.totalorder %v312_v59, 0 }
 0x12f   :  { %v533_v20 = vmax.f32 %v234_v18, %v248_v17 }
 0x130   :  { %v259_v21 = vrot.slane %v531_v19, 1  ;;  %v265_v26 = vrot.slane %v531_v19, 2  ;;  %v271_v29 = vrot.slane %v531_v19, 3  ;;  %v277_v37 = vrot.slane %v531_v19, 4 }
 0x131   :  { %v260_v23 = vrot.slane %v533_v20, 1  ;;  %v266_v28 = vrot.slane %v533_v20, 2  ;;  %v272_v32 = vrot.slane %v533_v20, 3  ;;  %v278_v40 = vrot.slane %v533_v20, 4 }
 0x132   :  { %v263_v25 = vadd.f32 %v259_v21, %v531_v19  ;;  %v283_v43 = vrot.slane %v531_v19, 5  ;;  %v284_v46 = vrot.slane %v533_v20, 5  ;;  %v289_v49 = vrot.slane %v531_v19, 6 }
 0x133   :  { %v264_v27 = vadd.f32 %v260_v23, %v533_v20  ;;  %v290_v52 = vrot.slane %v533_v20, 6  ;;  %v255_v54 = vmax.f32 %v239_v41, %v251_v48  ;;  %v295_v58 = vrot.slane %v531_v19, 7 }
 0x134   :  { %v269_v31 = vadd.f32 %v265_v26, %v263_v25  ;;  %v256_v60 = vmax.f32 %v240_v45, %v252_v50  ;;  %v296_v62 = vrot.slane %v533_v20, 7 }
 0x135   :  { %v270_v34 = vadd.f32 %v266_v28, %v264_v27  ;;  %vm301_vm6 = vcmp.ge.f32.partialorder %v255_v54, 0.95 }
 0x136   :  { %v275_v36 = vadd.f32 %v271_v29, %v269_v31  ;;  %vm302_vm9 = vcmp.ge.f32.partialorder %v256_v60, 0.95 }
 0x137   :  { %v276_v39 = vadd.f32 %v272_v32, %v270_v34 }
 0x138   :  { %v281_v42 = vadd.f32 %v277_v37, %v275_v36 }
 0x139   :  { %v282_v0 = vadd.f32 %v278_v40, %v276_v39 }
 0x13a   :  { %v287_v1 = vadd.f32 %v283_v43, %v281_v42 }
 0x13b   :  { %v288_v51 = vadd.f32 %v284_v46, %v282_v0 }
 0x13c   :  { %v293_v57 = vadd.f32 %v289_v49, %v287_v1 }
 0x13d   :  { %v294_v61 = vadd.f32 %v290_v52, %v288_v51 }
 0x13e   :  { %v299_v63 = vadd.f32 %v295_v58, %v293_v57 }
 0x13f   :  { %v300_v2 = vadd.f32 %v296_v62, %v294_v61 }
 0x140   :  { %vm303_vm7 = vcmp.eq.f32.partialorder %v299_v63, 0.0 }
 0x141   :  { %vm304_vm10 = vcmp.eq.f32.partialorder %v300_v2, 0.0  ;;  %vm305_vm11 = vmor %vm301_vm6, %vm303_vm7 }
 0x142   :  { %vm306_vm12 = vmor %vm302_vm9, %vm304_vm10 }
 0x143   :  { %vm315_vm13 = vmor %vm305_vm11, %vm313_vm5 }
 0x144   :  { %vm316_vm14 = vmor %vm306_vm12, %vm314_vm8  ;;  %v317_v3 = vsel %vm315_vm13, 1, %v413_v7 }
 0x145   :  { %v318_v4 = vsel %vm316_vm14, 1, %v413_v7  ;;  %v319_v5 = vperm.slane %v317_v3, 0 }
 0x146   :  { %v320_v6 = vperm.slane %v318_v4, 0 }
 0x147   :  { %vm321_vm15 = vcmp.eq.s32.totalorder %v319_v5, 1 }
 0x148   :  { %vm322_vm0 = vcmp.eq.s32.totalorder %v320_v6, 1  ;;  %v323_v8 = vsel %vm321_vm15, %v519_v55, 0.0  ;;  %v327_v9 = vsel %vm321_vm15, 0.0, %v531_v19 }
 0x149   :  { %v324_v10 = vsel %vm322_vm0, %v521_v56, 0.0  ;;  %325 = vst [vmem:[#allocation2] sm:$0xf] %v323_v8  ;;  %v328_v11 = vsel %vm322_vm0, 0.0, %v533_v20  ;;  %v331_v7 = vrot.slane %v327_v9, 4 }
 0x14a   :  { %326 = vst [vmem:[#allocation2 + $0x8] sm:$0xf] %v324_v10  ;;  %v332_v12 = vrot.slane %v328_v11, 4 }
 0x14b   :  { %335 = vst [vmem:[#allocation2] sm:$0xf0] %v331_v7 }
 0x14c   :  { %336 = vst [vmem:[#allocation2 + $0x8] sm:$0xf0] %v332_v12 }
 0x14d   :  { %337 = vst [vmem:[#allocation2 + $0x10] sm:$0xf] %v331_v7 }
 0x14e   :  { %338 = vst [vmem:[#allocation2 + $0x18] sm:$0xf] %v332_v12 }
 0x14f   :  { %351 = dma.vmem_to_hbm [thread:$0]  %s344_s4, 512, %s346_s25, [#allocation3], %s418_s26, %s418_s26, %s419_s27  }
 0x150   :  { %411 = dma.done.wait [#allocation3], 512  }
 0x151   :  { %412 = vsyncadd [#allocation3], 4294966784 }
 0x152   :  { %356 = vsyncpa [#allocation3], 1 }

</bundles_post_ra>
